<compile_context>
chip_gen: v7x
topology: tpu7x:2x2x1
jax: 0.10.0
libtpu: 0.0.40
codegen_flags: <defaults>
</compile_context>

<pallas_src>
import math

import jax
import jax.numpy as jnp
from jax.experimental import pallas as pl
from jax.experimental.pallas import tpu as pltpu


def _detect_level_kernel(x_ref, w_ref, b_ref, o_ref):
    # x: (t_hw, cin)   w: (cin, no)   b: (1, no)   o: (t_hw, no)
    acc = jnp.dot(x_ref[...], w_ref[...], preferred_element_type=jnp.float32)
    acc = acc + b_ref[...]                      # bias broadcast over spatial rows
    o_ref[...] = acc.astype(o_ref.dtype)


def _pick_hw_tile(hw, cin, no, itemsize):
    """Spatial tile (sublane dim of both x and out blocks): sized toward ~2 MiB of
    activations + output per block; must divide hw and be a multiple of 8
    (prefer a multiple of 128).  Falls back to the full extent."""
    per_col = (cin + no) * itemsize
    budget = max(128, ((2 << 20) // per_col) // 128 * 128)
    if hw <= budget:
        return hw
    for step in (128, 8):
        t = (budget // step) * step
        while t >= step:
            if hw % t == 0:
                return t
            t -= step
    return hw


def detect_level_pallas(x, weight, bias, na, no):
    """One Detect level: 1x1 conv + view(bs,na,no,ny,nx) + permute(0,1,3,4,2).

    x: (bs, cin, ny, nx), weight: (na*no, cin, 1, 1), bias: (na*no,)
    returns (bs, na, ny, nx, no).
    """
    bs, cin, ny, nx = x.shape
    hw = ny * nx
    assert weight.shape[0] == na * no

    # Activations as (bs, hw, cin): lane dim = cin (full extent), MXU-ready, and
    # lets the kernel emit the final (..., hw, no) layout with no output permute.
    xt = x.reshape(bs, cin, hw).transpose(0, 2, 1)

    # Per-anchor weights (cin, no) and bias (1, no); conv-output channel a*no + c
    # maps to (anchor a, channel c), matching view(bs, na, no, ny, nx).
    w3 = weight.reshape(na, no, cin).transpose(0, 2, 1).astype(x.dtype)
    b3 = bias.reshape(na, 1, no).astype(jnp.float32)

    t_hw = _pick_hw_tile(hw, cin, no, x.dtype.itemsize)
    grid = (bs, hw // t_hw, na)

    out = pl.pallas_call(
        _detect_level_kernel,
        out_shape=jax.ShapeDtypeStruct((bs, na, hw, no), x.dtype),
        grid=grid,
        in_specs=[
            # activations: block index ignores the anchor axis -> stays resident
            pl.BlockSpec((None, t_hw, cin), lambda bi, hi, ai: (bi, hi, 0)),
            pl.BlockSpec((None, cin, no), lambda bi, hi, ai: (ai, 0, 0)),   # W_a
            pl.BlockSpec((None, 1, no), lambda bi, hi, ai: (ai, 0, 0)),     # b_a
        ],
        out_specs=pl.BlockSpec((None, None, t_hw, no),
                               lambda bi, hi, ai: (bi, ai, hi, 0)),
        compiler_params=pltpu.CompilerParams(
            dimension_semantics=("parallel", "parallel", "arbitrary"),
            vmem_limit_bytes=32 * 1024 * 1024,   # blocks are <= ~2.5 MiB total
        ),
    )(xt, w3, b3)

    return out.reshape(bs, na, ny, nx, no)


class DetectPallas:
    """JAX/Pallas port of the YOLOv5 `Detect` head (training-mode forward)."""

    def __init__(self, nc=80, anchors=(), ch=(), key=None):
        self.nc = nc
        self.no = nc + 5
        self.nl = len(anchors)
        self.na = len(anchors[0]) // 2
        a = jnp.asarray(anchors, dtype=jnp.float32).reshape(self.nl, -1, 2)
        self.anchors = a
        self.anchor_grid = a.reshape(self.nl, 1, -1, 1, 1, 2)
        cout = self.no * self.na
        keys = jax.random.split(key, 2 * len(ch))
        self.weights, self.biases = [], []
        for i, cin in enumerate(ch):
            bound = 1.0 / math.sqrt(cin)         # PyTorch Conv2d default init
            w = jax.random.uniform(keys[2 * i], (cout, cin, 1, 1), jnp.float32, -bound, bound)
            b = jax.random.uniform(keys[2 * i + 1], (cout,), jnp.float32, -bound, bound)
            self.weights.append(w)
            self.biases.append(b)

    def __call__(self, xs):
        outs = []
        for i in range(self.nl):
            y = detect_level_pallas(xs[i], self.weights[i], self.biases[i],
                                    self.na, self.no)      # (bs, na, ny, nx, no)
            outs.append(y)
        # TODO(synk): eval-mode decode (sigmoid + grid/anchor/stride box transform) is not
        # implemented; the spec's Detect.stride is None and training=True, so it never runs.
        return outs


def detect_ref(xs, weights, biases, na, no):
    """Pure-JAX reference for the training-mode Detect forward."""
    outs = []
    for x, w, b in zip(xs, weights, biases):
        bs, cin, ny, nx = x.shape
        wm = w.reshape(-1, cin)
        y = jnp.einsum("oc,bcyx->boyx", wm, x,
                       precision=jax.lax.Precision.HIGHEST) + b[None, :, None, None]
        y = y.reshape(bs, na, no, ny, nx).transpose(0, 1, 3, 4, 2)
        outs.append(y)
    return outs


if __name__ == "__main__":
    key = jax.random.PRNGKey(0)
    k_init, k0, k1 = jax.random.split(key, 3)

    nc = 80
    anchors = ((10, 13, 16, 30, 33, 23), (30, 61, 62, 45, 59, 119))   # nl=2 levels, na=3
    ch = (4, 8)

    det = DetectPallas(nc=nc, anchors=anchors, ch=ch, key=k_init)

    # Small NCHW feature maps consistent with a 2-level detection head.
    x0 = jax.random.normal(k0, (2, ch[0], 16, 16), dtype=jnp.float32)
    x1 = jax.random.normal(k1, (2, ch[1], 8, 8), dtype=jnp.float32)

    # Snap test inputs/params to bf16-representable f32 values so the MXU's bf16
    # input rounding is exact and the result compares tightly against f32 reference.
    snap = lambda t: t.astype(jnp.bfloat16).astype(jnp.float32)
    xs = [snap(x0), snap(x1)]
    det.weights = [snap(w) for w in det.weights]
    det.biases = [snap(b) for b in det.biases]

    outs = det(xs)
    jax.block_until_ready(outs)

    refs = detect_ref(xs, det.weights, det.biases, det.na, det.no)
    for o, r in zip(outs, refs):
        assert o.shape == r.shape, (o.shape, r.shape)
        assert jnp.allclose(o, r, atol=1e-4, rtol=1e-4), float(jnp.max(jnp.abs(o - r)))

    print("KERNEL_OK")
</pallas_src>

<mosaic_0001>
module attributes {stable_mosaic.version = 11 : i64} {
  func.func @_detect_level_kernel(%arg0: i32, %arg1: i32, %arg2: i32, %arg3: memref<1x256x4xf32, #tpu.memory_space<vmem>>, %arg4: memref<1x4x85xf32, #tpu.memory_space<vmem>>, %arg5: memref<1x1x85xf32, #tpu.memory_space<vmem>>, %arg6: memref<1x1x256x85xf32, #tpu.memory_space<vmem>>) attributes {dimension_semantics = [#tpu.dimension_semantics<parallel>, #tpu.dimension_semantics<parallel>, #tpu.dimension_semantics<arbitrary>], iteration_bounds = array<i64: 2, 1, 3>, scalar_prefetch = 0 : i64, scratch_operands = 0 : i64, tpu.core_type = #tpu.core_type<tc>, window_params = [{transform_indices = @transform_0, window_bounds = array<i64: 1, 256, 4>}, {transform_indices = @transform_1, window_bounds = array<i64: 1, 4, 85>}, {transform_indices = @transform_2, window_bounds = array<i64: 1, 1, 85>}, {transform_indices = @transform_3, window_bounds = array<i64: 1, 1, 256, 85>}]} {
    %c0 = arith.constant 0 : index
    %c0_0 = arith.constant 0 : index
    %c0_1 = arith.constant 0 : index
    %0 = vector.load %arg3[%c0, %c0_0, %c0_1] : memref<1x256x4xf32, #tpu.memory_space<vmem>>, vector<1x256x4xf32>
    %1 = vector.shape_cast %0 : vector<1x256x4xf32> to vector<256x4xf32>
    %c0_2 = arith.constant 0 : index
    %c0_3 = arith.constant 0 : index
    %c0_4 = arith.constant 0 : index
    %2 = vector.load %arg4[%c0_2, %c0_3, %c0_4] : memref<1x4x85xf32, #tpu.memory_space<vmem>>, vector<1x4x85xf32>
    %3 = vector.shape_cast %2 : vector<1x4x85xf32> to vector<4x85xf32>
    %cst = arith.constant dense<0.000000e+00> : vector<256x85xf32>
    %4 = tpu.matmul %1, %3, %cst {dimension_numbers = #tpu.dot_dimension_numbers<[1], [0], [0], [1], [0, 0, 1, 1], [], []>} : vector<256x4xf32>, vector<4x85xf32>, vector<256x85xf32> -> vector<256x85xf32>
    %c0_5 = arith.constant 0 : index
    %c0_6 = arith.constant 0 : index
    %c0_7 = arith.constant 0 : index
    %5 = vector.load %arg5[%c0_5, %c0_6, %c0_7] : memref<1x1x85xf32, #tpu.memory_space<vmem>>, vector<1x1x85xf32>
    %6 = vector.shape_cast %5 : vector<1x1x85xf32> to vector<1x85xf32>
    %7 = vector.broadcast %6 : vector<1x85xf32> to vector<256x85xf32>
    %8 = arith.addf %4, %7 : vector<256x85xf32>
    %c0_8 = arith.constant 0 : index
    %c0_9 = arith.constant 0 : index
    %c0_10 = arith.constant 0 : index
    %c0_11 = arith.constant 0 : index
    %9 = vector.load %arg6[%c0_8, %c0_9, %c0_10, %c0_11] : memref<1x1x256x85xf32, #tpu.memory_space<vmem>>, vector<1x1x256x85xf32>
    %10 = vector.shape_cast %9 : vector<1x1x256x85xf32> to vector<256x85xf32>
    %11 = vector.shape_cast %8 : vector<256x85xf32> to vector<1x1x256x85xf32>
    tpu.vector_store %arg6[%c0_8, %c0_9, %c0_10, %c0_11], %11 {strides = array<i32>} : memref<1x1x256x85xf32, #tpu.memory_space<vmem>>, vector<1x1x256x85xf32>,
    return
  }
  func.func @transform_0(%arg0: i32, %arg1: i32, %arg2: i32) -> (i32, i32, i32) {
    %c0_i32 = arith.constant 0 : i32
    %c0_i32_0 = arith.constant 0 : i32
    return %arg0, %arg1, %c0_i32 : i32, i32, i32
  }
  func.func @transform_1(%arg0: i32, %arg1: i32, %arg2: i32) -> (i32, i32, i32) {
    %c0_i32 = arith.constant 0 : i32
    %c0_i32_0 = arith.constant 0 : i32
    %c0_i32_1 = arith.constant 0 : i32
    return %arg2, %c0_i32, %c0_i32_0 : i32, i32, i32
  }
  func.func @transform_2(%arg0: i32, %arg1: i32, %arg2: i32) -> (i32, i32, i32) {
    %c0_i32 = arith.constant 0 : i32
    %c0_i32_0 = arith.constant 0 : i32
    %c0_i32_1 = arith.constant 0 : i32
    return %arg2, %c0_i32, %c0_i32_0 : i32, i32, i32
  }
  func.func @transform_3(%arg0: i32, %arg1: i32, %arg2: i32) -> (i32, i32, i32, i32) {
    %c0_i32 = arith.constant 0 : i32
    %c0_i32_0 = arith.constant 0 : i32
    return %arg0, %arg2, %arg1, %c0_i32 : i32, i32, i32, i32
  }
}

</mosaic_0001>

<bundles_post_ra>
// kernel: tpu_custom_call.1
= control target key start
LH: loop header
LB: loop body
LE: loop exit
PB: predicated region body
PF: predicated region fallthrough
CT: control target
= control target key end

     0   :  { %s1020_s12 = smov 0   ;;  %s1022_s13 = smov 0   ;;  %s1255_s0 = inlined_call_operand.vmem [shape: f32[2,256,4], index: 0, kind: input, shape index: {}]   ;;  %s1256_s1 = inlined_call_operand.vmem [shape: f32[3,4,85], index: 1, kind: input, shape index: {}]   ;;  %s1257_s2 = inlined_call_operand.vmem [shape: f32[3,1,85], index: 2, kind: input, shape index: {}]   ;;  %s1258_s3 = inlined_call_operand.vmem [shape: f32[2,3,256,85], index: 3, kind: output, shape index: {}]  }
   0x1   :  { %s1024_s14 = smov 0   ;;  %s1026_s15 = smov 0  }
   0x2   :  { %s1028_s16 = smov 0  }
   0x3 LB: > { %s25_s17 = sadd.s32 1, %s990_s14  ;;  %s32_s18 = sadd.s32 1, %s994_s15  ;;  %s998_s16 = sphi %s1028_s16, %s13_s16   ;;  %s994_s15 = sphi %s1026_s15, %s1262_s15   ;;  %s990_s14 = sphi %s1024_s14, %s1261_s14   ;;  %s986_s13 = sphi %s1022_s13, %s1260_s13   ;;  %s982_s12 = sphi %s1020_s12, %s1259_s12  }
   0x4   : > { %p26_p0 = scmp.ge.s32.totalorder %s25_s17, 3  ;;  %p791_p1 = scmp.ge.s32.totalorder %s998_s16, 1 }
   0x5   : > { %p184_p2 = scmp.lt.s32.totalorder %s998_s16, 7 }
   0x6   : > { %s1264_s17 = smov (%p26_p0, %s25_s17), 0  ;;  %s1266_s18 = smov (!%p26_p0, %s32_s18), %s994_s15 }
   0x7   : > { %p185_p3 = pnand %p791_p1, %p184_p2  ;;  %p34_p4 = scmp.ge.s32.totalorder %s1266_s18, 2 }
   0x8   : > { %p228_p5 = scmp.lt.s32.totalorder (!%p185_p3), %s986_s13, 1  ;;  %p237_p6 = scmp.lt.s32.totalorder (!%p185_p3), %s982_s12, 2  ;;  %vm298_vm0 = vcmask (!%p185_p3), 31744   ;;  %vm395_vm1 = vcmask (!%p185_p3), 1043456   ;;  %vm624_vm2 = vcmask (!%p185_p3), 695296  }
   0x9   : > { %s1268_s18 = smov (%p34_p4, %s1266_s18), 0  ;;  %188 = sbr.rel (%p185_p3) target bundleno = 268 (0x10c), region = 32 }
  0x10   : > { %s1270_s13 = smov (!%p228_p5, %s986_s13), 1  ;;  %s1272_s12 = smov (!%p237_p6, %s982_s12), 2 }
  0x11   : > { %s833_s19 = sshll.u32 %s1270_s13, 8  ;;  %s919_s20 = smul.u32 96, %s1270_s13 }
  0x12   : > { %s1055_s23 = scalar_lea.vmem %s1255_s0, %s833_s19  ;;  %s794_s24 = sshll.u32 %s1272_s12, 2 }
  0x13   : > { %s240_s27 = scalar_lea.vmem %s1256_s1, %s794_s24  ;;  %v258_v0 = vld [vmem:[%s1055_s23] sm:$0xff]  ;;  %s795_s28 = sshll.u32 %s1272_s12, 5  ;;  %v259_v3 = vld [vmem:[%s1055_s23 + $0x8] sm:$0xff]  ;;  %v260_v5 = vld [vmem:[%s1055_s23 + $0x10] sm:$0xff] }
  0x14   : > { %v274_v1 = vld [vmem:[%s1055_s23 + $0x80] sm:$0xff]  ;;  %869 = vmatprep.mubr.msk.f32.mxu0 %vm298_vm0, %v258_v0  ;;  %v275_v4 = vld [vmem:[%s1055_s23 + $0x88] sm:$0xff]  ;;  %s1068_s29 = sadd.s32 %s919_s20, %s795_s28  ;;  %v276_v6 = vld [vmem:[%s1055_s23 + $0x90] sm:$0xff]  ;;  %s243_s5 = scalar_lea.vmem %s1257_s2, %s1272_s12 }
  0x15   : > { %v290_v2 = vld [vmem:[%s240_s27] sm:$0xf]  ;;  %893 = vmatprep.mubr.msk.f32.mxu1 %vm298_vm0, %v274_v1  ;;  %v261_v7 = vld [vmem:[%s1055_s23 + $0x18] sm:$0xff]  ;;  %v263_v11 = vld [vmem:[%s1055_s23 + $0x28] sm:$0xff]  ;;  %s796_s6 = sshll.u32 %s1068_s29, 3 }
  0x16   : > { %867 = vmatprep.subr.msk.mxu0 %vm395_vm1, %v290_v2  ;;  %917 = vmatprep.subr.msk.mxu1 %vm395_vm1, %v290_v2  ;;  %v277_v8 = vld [vmem:[%s1055_s23 + $0x98] sm:$0xff]  ;;  %v262_v9 = vld [vmem:[%s1055_s23 + $0x20] sm:$0xff]  ;;  %v279_v12 = vld [vmem:[%s1055_s23 + $0xa8] sm:$0xff]  ;;  %s1142_s9 = scalar_lea.vmem %s1258_s3, %s796_s6 }
  0x17   : > { %868 = vmatpush3.msk.msra.mxu0 %vm395_vm1, %v290_v2  ;;  %918 = vmatpush3.msk.msra.mxu1 %vm395_vm1, %v290_v2  ;;  %v278_v10 = vld [vmem:[%s1055_s23 + $0xa0] sm:$0xff]  ;;  %v264_v13 = vld [vmem:[%s1055_s23 + $0x30] sm:$0xff]  ;;  %v265_v15 = vld [vmem:[%s1055_s23 + $0x38] sm:$0xff] }
  0x18   : > { %870 = vmatmul.mubr.msk.f32.vlgmr.msra.gmra.mrb[0].mxu0 %vm298_vm0, %v259_v3  ;;  %894 = vmatmul.mubr.msk.f32.vlgmr.msra.gmra.mrb[0].mxu1 %vm298_vm0, %v275_v4  ;;  %v280_v14 = vld [vmem:[%s1055_s23 + $0xb0] sm:$0xff]  ;;  %v281_v16 = vld [vmem:[%s1055_s23 + $0xb8] sm:$0xff]  ;;  %v266_v17 = vld [vmem:[%s1055_s23 + $0x40] sm:$0xff] }
  0x19   : > { %872 = vmatprep.mubr.msk.f32.mxu0 %vm298_vm0, %v260_v5  ;;  %896 = vmatprep.mubr.msk.f32.mxu1 %vm298_vm0, %v276_v6  ;;  %v282_v18 = vld [vmem:[%s1055_s23 + $0xc0] sm:$0xff]  ;;  %v267_v19 = vld [vmem:[%s1055_s23 + $0x48] sm:$0xff]  ;;  %v268_v21 = vld [vmem:[%s1055_s23 + $0x50] sm:$0xff] }
  0x1a   : > { %v283_v20 = vld [vmem:[%s1055_s23 + $0xc8] sm:$0xff]  ;;  %v284_v22 = vld [vmem:[%s1055_s23 + $0xd0] sm:$0xff]  ;;  %v269_v23 = vld [vmem:[%s1055_s23 + $0x58] sm:$0xff] }
  0x1b   : > { %v285_v24 = vld [vmem:[%s1055_s23 + $0xd8] sm:$0xff]  ;;  %v270_v25 = vld [vmem:[%s1055_s23 + $0x60] sm:$0xff]  ;;  %v271_v27 = vld [vmem:[%s1055_s23 + $0x68] sm:$0xff] }
  0x1c   : > { %873 = vmatmul.mubr.msk.f32.gmra.mrb[2].mxu0 %vm298_vm0, %v261_v7  ;;  %897 = vmatmul.mubr.msk.f32.gmra.mrb[2].mxu1 %vm298_vm0, %v277_v8  ;;  %v286_v26 = vld [vmem:[%s1055_s23 + $0xe0] sm:$0xff]  ;;  %v287_v28 = vld [vmem:[%s1055_s23 + $0xe8] sm:$0xff]  ;;  %v272_v29 = vld [vmem:[%s1055_s23 + $0x70] sm:$0xff] }
  0x1d   : > { %875 = vmatprep.mubr.msk.f32.mxu0 %vm298_vm0, %v262_v9  ;;  %899 = vmatprep.mubr.msk.f32.mxu1 %vm298_vm0, %v278_v10  ;;  %v288_v30 = vld [vmem:[%s1055_s23 + $0xf0] sm:$0xff]  ;;  %v273_v31 = vld [vmem:[%s1055_s23 + $0x78] sm:$0xff]  ;;  %v1137_v33 = vld [vmem:[%s243_s5] ss:$0 sm:$0xff] }
  0x1e   : > { %v289_v32 = vld [vmem:[%s1055_s23 + $0xf8] sm:$0xff] }
  0x20   : > { %876 = vmatmul.mubr.msk.f32.gmra.mrb[4].mxu0 %vm298_vm0, %v263_v11  ;;  %900 = vmatmul.mubr.msk.f32.gmra.mrb[4].mxu1 %vm298_vm0, %v279_v12 }
  0x21   : > { %878 = vmatprep.mubr.msk.f32.mxu0 %vm298_vm0, %v264_v13  ;;  %902 = vmatprep.mubr.msk.f32.mxu1 %vm298_vm0, %v280_v14 }
  0x24   : > { %879 = vmatmul.mubr.msk.f32.gmra.mrb[6].mxu0 %vm298_vm0, %v265_v15  ;;  %903 = vmatmul.mubr.msk.f32.gmra.mrb[6].mxu1 %vm298_vm0, %v281_v16 }
  0x25   : > { %881 = vmatprep.mubr.msk.f32.mxu0 %vm298_vm0, %v266_v17  ;;  %905 = vmatprep.mubr.msk.f32.mxu1 %vm298_vm0, %v282_v18 }
  0x28   : > { %882 = vmatmul.mubr.msk.f32.gmra.mrb[8].mxu0 %vm298_vm0, %v267_v19  ;;  %906 = vmatmul.mubr.msk.f32.gmra.mrb[8].mxu1 %vm298_vm0, %v283_v20 }
  0x29   : > { %884 = vmatprep.mubr.msk.f32.mxu0 %vm298_vm0, %v268_v21  ;;  %908 = vmatprep.mubr.msk.f32.mxu1 %vm298_vm0, %v284_v22 }
  0x2c   : > { %885 = vmatmul.mubr.msk.f32.gmra.mrb[10].mxu0 %vm298_vm0, %v269_v23  ;;  %909 = vmatmul.mubr.msk.f32.gmra.mrb[10].mxu1 %vm298_vm0, %v285_v24 }
  0x2d   : > { %887 = vmatprep.mubr.msk.f32.mxu0 %vm298_vm0, %v270_v25  ;;  %911 = vmatprep.mubr.msk.f32.mxu1 %vm298_vm0, %v286_v26 }
  0x30   : > { %888 = vmatmul.mubr.msk.f32.gmra.mrb[12].mxu0 %vm298_vm0, %v271_v27  ;;  %912 = vmatmul.mubr.msk.f32.gmra.mrb[12].mxu1 %vm298_vm0, %v287_v28 }
  0x31   : > { %890 = vmatprep.mubr.msk.f32.mxu0 %vm298_vm0, %v272_v29  ;;  %914 = vmatprep.mubr.msk.f32.mxu1 %vm298_vm0, %v288_v30 }
  0x34   : > { %891 = vmatmul.mubr.msk.f32.gmra.mrb[14].mxu0 %vm298_vm0, %v273_v31  ;;  %915 = vmatmul.mubr.msk.f32.gmra.mrb[14].mxu1 %vm298_vm0, %v289_v32 }
  0xeb   : > { %v871_v34 = vpop.f32.mrb[0].mxu0  ;;  %v895_v35 = vpop.f32.mrb[0].mxu1 }
  0xec   : > { %v471_v36 = vadd.f32 %v871_v34, %v1137_v33  ;;  %v551_v37 = vadd.f32 %v895_v35, %v1137_v33  ;;  %v465_v38 = vpop.f32.mrb[1].mxu0  ;;  %v545_v39 = vpop.f32.mrb[1].mxu1 }
  0xed   : > { %v466_v40 = vadd.f32 %v1137_v33, %v465_v38  ;;  %v546_v41 = vadd.f32 %v1137_v33, %v545_v39 }
  0xee   : > { %626 = vst.msk [vmem:[%s1142_s9 + $0x8] sm:$0xff] %vm624_vm2, %v471_v36  ;;  %642 = vst.msk [vmem:[%s1142_s9 + $0x88] sm:$0xff] %vm624_vm2, %v551_v37 }
  0xef   : > { %625 = vst.msk [vmem:[%s1142_s9] sm:$0xff] %vm624_vm2, %v466_v40  ;;  %641 = vst.msk [vmem:[%s1142_s9 + $0x80] sm:$0xff] %vm624_vm2, %v546_v41  ;;  %v874_v42 = vpop.f32.mrb[2].mxu0  ;;  %v898_v43 = vpop.f32.mrb[2].mxu1 }
  0xf0   : > { %v481_v44 = vadd.f32 %v874_v42, %v1137_v33  ;;  %v561_v45 = vadd.f32 %v898_v43, %v1137_v33  ;;  %v475_v46 = vpop.f32.mrb[3].mxu0  ;;  %v555_v47 = vpop.f32.mrb[3].mxu1 }
  0xf1   : > { %v476_v48 = vadd.f32 %v1137_v33, %v475_v46  ;;  %v556_v49 = vadd.f32 %v1137_v33, %v555_v47 }
  0xf2   : > { %628 = vst.msk [vmem:[%s1142_s9 + $0x18] sm:$0xff] %vm624_vm2, %v481_v44  ;;  %644 = vst.msk [vmem:[%s1142_s9 + $0x98] sm:$0xff] %vm624_vm2, %v561_v45 }
  0xf3   : > { %627 = vst.msk [vmem:[%s1142_s9 + $0x10] sm:$0xff] %vm624_vm2, %v476_v48  ;;  %643 = vst.msk [vmem:[%s1142_s9 + $0x90] sm:$0xff] %vm624_vm2, %v556_v49  ;;  %v877_v50 = vpop.f32.mrb[4].mxu0  ;;  %v901_v51 = vpop.f32.mrb[4].mxu1 }
  0xf4   : > { %v491_v52 = vadd.f32 %v877_v50, %v1137_v33  ;;  %v571_v53 = vadd.f32 %v901_v51, %v1137_v33  ;;  %v485_v54 = vpop.f32.mrb[5].mxu0  ;;  %v565_v55 = vpop.f32.mrb[5].mxu1 }
  0xf5   : > { %v486_v56 = vadd.f32 %v1137_v33, %v485_v54  ;;  %v566_v57 = vadd.f32 %v1137_v33, %v565_v55 }
  0xf6   : > { %630 = vst.msk [vmem:[%s1142_s9 + $0x28] sm:$0xff] %vm624_vm2, %v491_v52  ;;  %646 = vst.msk [vmem:[%s1142_s9 + $0xa8] sm:$0xff] %vm624_vm2, %v571_v53 }
  0xf7   : > { %629 = vst.msk [vmem:[%s1142_s9 + $0x20] sm:$0xff] %vm624_vm2, %v486_v56  ;;  %645 = vst.msk [vmem:[%s1142_s9 + $0xa0] sm:$0xff] %vm624_vm2, %v566_v57  ;;  %v880_v58 = vpop.f32.mrb[6].mxu0  ;;  %v904_v59 = vpop.f32.mrb[6].mxu1 }
  0xf8   : > { %v501_v60 = vadd.f32 %v880_v58, %v1137_v33  ;;  %v581_v61 = vadd.f32 %v904_v59, %v1137_v33  ;;  %v495_v62 = vpop.f32.mrb[7].mxu0  ;;  %v575_v63 = vpop.f32.mrb[7].mxu1 }
  0xf9   : > { %v496_v0 = vadd.f32 %v1137_v33, %v495_v62  ;;  %v576_v1 = vadd.f32 %v1137_v33, %v575_v63 }
  0xfa   : > { %632 = vst.msk [vmem:[%s1142_s9 + $0x38] sm:$0xff] %vm624_vm2, %v501_v60  ;;  %648 = vst.msk [vmem:[%s1142_s9 + $0xb8] sm:$0xff] %vm624_vm2, %v581_v61 }
  0xfb   : > { %631 = vst.msk [vmem:[%s1142_s9 + $0x30] sm:$0xff] %vm624_vm2, %v496_v0  ;;  %647 = vst.msk [vmem:[%s1142_s9 + $0xb0] sm:$0xff] %vm624_vm2, %v576_v1  ;;  %v883_v2 = vpop.f32.mrb[8].mxu0  ;;  %v907_v3 = vpop.f32.mrb[8].mxu1 }
  0xfc   : > { %v511_v4 = vadd.f32 %v883_v2, %v1137_v33  ;;  %v591_v5 = vadd.f32 %v907_v3, %v1137_v33  ;;  %v505_v6 = vpop.f32.mrb[9].mxu0  ;;  %v585_v7 = vpop.f32.mrb[9].mxu1 }
  0xfd   : > { %v506_v8 = vadd.f32 %v1137_v33, %v505_v6  ;;  %v586_v9 = vadd.f32 %v1137_v33, %v585_v7 }
  0xfe   : > { %634 = vst.msk [vmem:[%s1142_s9 + $0x48] sm:$0xff] %vm624_vm2, %v511_v4  ;;  %650 = vst.msk [vmem:[%s1142_s9 + $0xc8] sm:$0xff] %vm624_vm2, %v591_v5 }
  0xff   : > { %633 = vst.msk [vmem:[%s1142_s9 + $0x40] sm:$0xff] %vm624_vm2, %v506_v8  ;;  %649 = vst.msk [vmem:[%s1142_s9 + $0xc0] sm:$0xff] %vm624_vm2, %v586_v9  ;;  %v886_v10 = vpop.f32.mrb[10].mxu0  ;;  %v910_v11 = vpop.f32.mrb[10].mxu1 }
 0x100   : > { %v521_v12 = vadd.f32 %v886_v10, %v1137_v33  ;;  %v601_v13 = vadd.f32 %v910_v11, %v1137_v33  ;;  %v515_v14 = vpop.f32.mrb[11].mxu0  ;;  %v595_v15 = vpop.f32.mrb[11].mxu1 }
 0x101   : > { %v516_v16 = vadd.f32 %v1137_v33, %v515_v14  ;;  %v596_v17 = vadd.f32 %v1137_v33, %v595_v15 }
 0x102   : > { %636 = vst.msk [vmem:[%s1142_s9 + $0x58] sm:$0xff] %vm624_vm2, %v521_v12  ;;  %652 = vst.msk [vmem:[%s1142_s9 + $0xd8] sm:$0xff] %vm624_vm2, %v601_v13 }
 0x103   : > { %635 = vst.msk [vmem:[%s1142_s9 + $0x50] sm:$0xff] %vm624_vm2, %v516_v16  ;;  %651 = vst.msk [vmem:[%s1142_s9 + $0xd0] sm:$0xff] %vm624_vm2, %v596_v17  ;;  %v889_v18 = vpop.f32.mrb[12].mxu0  ;;  %v913_v19 = vpop.f32.mrb[12].mxu1 }
 0x104   : > { %v531_v20 = vadd.f32 %v889_v18, %v1137_v33  ;;  %v611_v21 = vadd.f32 %v913_v19, %v1137_v33  ;;  %v525_v22 = vpop.f32.mrb[13].mxu0  ;;  %v605_v23 = vpop.f32.mrb[13].mxu1 }
 0x105   : > { %v526_v24 = vadd.f32 %v1137_v33, %v525_v22  ;;  %v606_v25 = vadd.f32 %v1137_v33, %v605_v23 }
 0x106   : > { %638 = vst.msk [vmem:[%s1142_s9 + $0x68] sm:$0xff] %vm624_vm2, %v531_v20  ;;  %654 = vst.msk [vmem:[%s1142_s9 + $0xe8] sm:$0xff] %vm624_vm2, %v611_v21 }
 0x107   : > { %637 = vst.msk [vmem:[%s1142_s9 + $0x60] sm:$0xff] %vm624_vm2, %v526_v24  ;;  %653 = vst.msk [vmem:[%s1142_s9 + $0xe0] sm:$0xff] %vm624_vm2, %v606_v25  ;;  %v892_v26 = vpop.f32.mrb[14].mxu0  ;;  %v916_v27 = vpop.f32.mrb[14].mxu1 }
 0x108   : > { %v541_v28 = vadd.f32 %v892_v26, %v1137_v33  ;;  %v621_v29 = vadd.f32 %v916_v27, %v1137_v33  ;;  %v535_v30 = vpop.f32.mrb[15].mxu0  ;;  %v615_v31 = vpop.f32.mrb[15].mxu1 }
 0x109   : > { %v536_v32 = vadd.f32 %v1137_v33, %v535_v30  ;;  %v616_v34 = vadd.f32 %v1137_v33, %v615_v31 }
 0x10a   : > { %640 = vst.msk [vmem:[%s1142_s9 + $0x78] sm:$0xff] %vm624_vm2, %v541_v28  ;;  %656 = vst.msk [vmem:[%s1142_s9 + $0xf8] sm:$0xff] %vm624_vm2, %v621_v29 }
 0x10b   : > { %639 = vst.msk [vmem:[%s1142_s9 + $0x70] sm:$0xff] %vm624_vm2, %v536_v32  ;;  %655 = vst.msk [vmem:[%s1142_s9 + $0xf0] sm:$0xff] %vm624_vm2, %v616_v34 }
 0x10c PF: > { %s13_s16 = sadd.s32 1, %s998_s16   ;;  %s1259_s12 = smov %s990_s14 }
 0x10d   : > { %p10_p7 = scmp.ge.s32.totalorder %s13_s16, 8   ;;  %s1260_s13 = smov %s994_s15 }
 0x10e   : > { %s1261_s14 = smov %s1264_s17  ;;  %s1262_s15 = smov %s1268_s18 }
 0x10f   :  { %12 = sbr.rel (!%p10_p7) target bundleno = 3 (0x3), region = 68 }

</bundles_post_ra>
